<compile_context>
chip_gen: v5e
topology: v5e:2x2
jax: 0.10.0
libtpu: 0.0.40
codegen_flags: <defaults>
</compile_context>

<pallas_src>
import functools

import jax
import jax.numpy as jnp
from jax.experimental import pallas as pl
from jax.experimental.pallas import tpu as pltpu


def _siglip_attn_kernel(x_ref, wq_ref, bq_ref, wk_ref, bk_ref, wv_ref, bv_ref,
                        wo_ref, bo_ref, out_ref, attnw_ref, attn_scr,
                        *, num_heads, head_dim, scale):
    H, D = num_heads, head_dim

    x = x_ref[0]                                      # (S, E) bf16

    # ---- Q/K/V projections: bf16 MXU matmuls, f32 accumulation. ----
    q = jnp.dot(x, wq_ref[...], preferred_element_type=jnp.float32) + bq_ref[...]
    k = jnp.dot(x, wk_ref[...], preferred_element_type=jnp.float32) + bk_ref[...]
    v = jnp.dot(x, wv_ref[...], preferred_element_type=jnp.float32) + bv_ref[...]

    # Fold the attention scale into q (S*E multiplies vs. S*S per head).
    q = q * scale

    qb = q.astype(jnp.bfloat16)
    kb = k.astype(jnp.bfloat16)
    vb = v.astype(jnp.bfloat16)

    # ---- Head-batched attention. ----
    # Split E into H heads of width D and batch them on a leading axis so the
    # score and PV matmuls run as single batched einsums (no per-head k.T).
    q3 = jnp.stack([qb[:, h * D:(h + 1) * D] for h in range(H)], axis=0)  # (H,S,D)
    k3 = jnp.stack([kb[:, h * D:(h + 1) * D] for h in range(H)], axis=0)  # (H,S,D)
    v3 = jnp.stack([vb[:, h * D:(h + 1) * D] for h in range(H)], axis=0)  # (H,S,D)

    # scores = (q*scale) @ k^T, contracted on the shared D axis (no transpose).
    s = jnp.einsum("hqd,hkd->hqk", q3, k3,
                   preferred_element_type=jnp.float32)        # (H,S,S) f32

    # softmax in float32 along the last axis.
    m = jnp.max(s, axis=-1, keepdims=True)
    e = jnp.exp(s - m)
    denom = jnp.sum(e, axis=-1, keepdims=True)
    p = e * pl.reciprocal(denom, approx=True)                 # (H,S,S) f32

    # All heads' attention weights in one store (dropout p=0 -> identity).
    attnw_ref[0] = p

    # attention output per head: one batched matmul.
    o3 = jnp.einsum("hqk,hkd->hqd", p.astype(jnp.bfloat16), v3,
                    preferred_element_type=jnp.float32)       # (H,S,D) f32

    # Merge heads (== torch transpose(1,2).reshape(B,S,E)): write each head's
    # slab into a VMEM scratch instead of a lane-axis concatenate.
    for h in range(H):
        attn_scr[:, h * D:(h + 1) * D] = o3[h].astype(jnp.bfloat16)

    # ---- output projection (full K = E contraction). ----
    out = jnp.dot(attn_scr[...], wo_ref[...],
                  preferred_element_type=jnp.float32) + bo_ref[...]
    out_ref[0] = out.astype(out_ref.dtype)


def siglip_attention(x, params, *, num_heads):
    """x: (B, S, E) float32. params: dict of pre-transposed weights/biases.

    Returns (attn_output (B,S,E), attn_weights (B,H,S,S)) matching the torch
    SiglipAttention.forward semantics (dropout p=0 / eval mode). Matmuls run
    with bf16 operands and f32 accumulation.
    """
    B, S, E = x.shape
    head_dim = E // num_heads
    scale = head_dim ** (-0.5)

    # bf16 operands for the MXU; biases stay f32 (added to the f32 accumulator).
    x_bf = x.astype(jnp.bfloat16)
    wq = params["wq"].astype(jnp.bfloat16)
    wk = params["wk"].astype(jnp.bfloat16)
    wv = params["wv"].astype(jnp.bfloat16)
    wo = params["wo"].astype(jnp.bfloat16)
    bq, bk, bv, bo = params["bq"], params["bk"], params["bv"], params["bo"]

    kernel = functools.partial(
        _siglip_attn_kernel,
        num_heads=num_heads, head_dim=head_dim, scale=scale)

    w_spec = pl.BlockSpec((E, E), lambda b: (0, 0))
    b_spec = pl.BlockSpec((1, E), lambda b: (0, 0))

    grid_spec = pltpu.PrefetchScalarGridSpec(
        num_scalar_prefetch=0,
        grid=(B,),
        in_specs=[
            pl.BlockSpec((1, S, E), lambda b: (b, 0, 0)),    # x
            w_spec, b_spec,                                  # wq, bq
            w_spec, b_spec,                                  # wk, bk
            w_spec, b_spec,                                  # wv, bv
            w_spec, b_spec,                                  # wo, bo
        ],
        out_specs=[
            pl.BlockSpec((1, S, E), lambda b: (b, 0, 0)),                # attn_output
            pl.BlockSpec((1, num_heads, S, S), lambda b: (b, 0, 0, 0)),  # attn_weights
        ],
        scratch_shapes=[pltpu.VMEM((S, E), jnp.bfloat16)],   # merged-heads slab
    )

    out_shapes = (
        jax.ShapeDtypeStruct((B, S, E), x.dtype),
        jax.ShapeDtypeStruct((B, num_heads, S, S), jnp.float32),
    )

    # Explicit scoped-VMEM budget: double-buffered in/out blocks + weights + scratch.
    est = (2 * S * E * 2                    # x block (bf16), double buffered
           + 2 * 4 * E * E * 2              # 4 weight blocks (bf16)
           + 2 * 4 * E * 4                  # 4 bias blocks (f32)
           + 2 * S * E * 4                  # attn_output block (f32)
           + 2 * num_heads * S * S * 4      # attn_weights block (f32)
           + S * E * 2)                     # scratch (bf16)
    vmem_limit = int(min(max(2 * est, 16 * 1024 * 1024), 100 * 1024 * 1024))

    return pl.pallas_call(
        kernel,
        grid_spec=grid_spec,
        out_shape=out_shapes,
        compiler_params=pltpu.CompilerParams(
            dimension_semantics=("parallel",),
            vmem_limit_bytes=vmem_limit),
    )(x_bf, wq, bq, wk, bk, wv, bv, wo, bo)


def _reference(x, params, *, num_heads):
    """Plain-JAX f32 reference mirroring the torch forward for verification."""
    B, S, E = x.shape
    D = E // num_heads
    scale = D ** (-0.5)

    def proj(w, b):
        return x @ w + b[0]

    q = proj(params["wq"], params["bq"]).reshape(B, S, num_heads, D).transpose(0, 2, 1, 3)
    k = proj(params["wk"], params["bk"]).reshape(B, S, num_heads, D).transpose(0, 2, 1, 3)
    v = proj(params["wv"], params["bv"]).reshape(B, S, num_heads, D).transpose(0, 2, 1, 3)

    s = jnp.einsum("bhqd,bhkd->bhqk", q, k) * scale
    w = jax.nn.softmax(s.astype(jnp.float32), axis=-1)
    o = jnp.einsum("bhqk,bhkd->bhqd", w, v)
    o = o.transpose(0, 2, 1, 3).reshape(B, S, E)
    o = o @ params["wo"] + params["bo"][0]
    return o, w


if __name__ == "__main__":
    # Small, deterministic synthetic setup consistent with SiglipAttention:
    # hidden_size=32, num_attention_heads=4 -> head_dim=8; batch=2, seq_len=8.
    B, S, E, H = 2, 8, 32, 4

    key = jax.random.PRNGKey(0)
    keys = jax.random.split(key, 9)
    x = jax.random.normal(keys[0], (B, S, E), dtype=jnp.float32)

    def make_linear(kw, kb):
        # torch nn.Linear weight is (out, in); we store it transposed (in, out).
        w = jax.random.normal(kw, (E, E), dtype=jnp.float32) * (1.0 / jnp.sqrt(E))
        b = jax.random.normal(kb, (1, E), dtype=jnp.float32) * 0.01
        return w, b

    wq, bq = make_linear(keys[1], keys[2])
    wk, bk = make_linear(keys[3], keys[4])
    wv, bv = make_linear(keys[5], keys[6])
    wo, bo = make_linear(keys[7], keys[8])

    params = dict(wq=wq, bq=bq, wk=wk, bk=bk, wv=wv, bv=bv, wo=wo, bo=bo)

    out, attn_w = siglip_attention(x, params, num_heads=H)
    out = jax.block_until_ready(out)
    attn_w = jax.block_until_ready(attn_w)

    # Verify against the plain-JAX f32 reference of the torch forward.
    # Tolerances account for bf16 matmul operands (f32 accumulation/softmax).
    ref_out, ref_w = _reference(x, params, num_heads=H)
    assert out.shape == (B, S, E)
    assert attn_w.shape == (B, H, S, S)
    assert jnp.allclose(out, ref_out, atol=5e-2, rtol=5e-2)
    assert jnp.allclose(attn_w, ref_w, atol=2e-2, rtol=2e-2)

    # NOTE: attention_dropout defaults to 0, so dropout is an identity here.
    print("KERNEL_OK")
</pallas_src>

<mosaic_0001>
module attributes {stable_mosaic.version = 11 : i64} {
  func.func @_siglip_attn_kernel(%arg0: i32, %arg1: memref<1x8x32xbf16, #tpu.memory_space<vmem>>, %arg2: memref<32x32xbf16, #tpu.memory_space<vmem>>, %arg3: memref<1x32xf32, #tpu.memory_space<vmem>>, %arg4: memref<32x32xbf16, #tpu.memory_space<vmem>>, %arg5: memref<1x32xf32, #tpu.memory_space<vmem>>, %arg6: memref<32x32xbf16, #tpu.memory_space<vmem>>, %arg7: memref<1x32xf32, #tpu.memory_space<vmem>>, %arg8: memref<32x32xbf16, #tpu.memory_space<vmem>>, %arg9: memref<1x32xf32, #tpu.memory_space<vmem>>, %arg10: memref<1x8x32xf32, #tpu.memory_space<vmem>>, %arg11: memref<1x4x8x8xf32, #tpu.memory_space<vmem>>, %arg12: memref<8x32xbf16, #tpu.memory_space<vmem>>) attributes {dimension_semantics = [#tpu.dimension_semantics<parallel>], iteration_bounds = array<i64: 2>, scalar_prefetch = 0 : i64, scratch_operands = 1 : i64, tpu.core_type = #tpu.core_type<tc>, window_params = [{transform_indices = @transform_0, window_bounds = array<i64: 1, 8, 32>}, {pipeline_mode = #tpu.pipeline_mode<synchronous>, transform_indices = @transform_1, window_bounds = array<i64: 32, 32>}, {pipeline_mode = #tpu.pipeline_mode<synchronous>, transform_indices = @transform_2, window_bounds = array<i64: 1, 32>}, {pipeline_mode = #tpu.pipeline_mode<synchronous>, transform_indices = @transform_3, window_bounds = array<i64: 32, 32>}, {pipeline_mode = #tpu.pipeline_mode<synchronous>, transform_indices = @transform_4, window_bounds = array<i64: 1, 32>}, {pipeline_mode = #tpu.pipeline_mode<synchronous>, transform_indices = @transform_5, window_bounds = array<i64: 32, 32>}, {pipeline_mode = #tpu.pipeline_mode<synchronous>, transform_indices = @transform_6, window_bounds = array<i64: 1, 32>}, {pipeline_mode = #tpu.pipeline_mode<synchronous>, transform_indices = @transform_7, window_bounds = array<i64: 32, 32>}, {pipeline_mode = #tpu.pipeline_mode<synchronous>, transform_indices = @transform_8, window_bounds = array<i64: 1, 32>}, {transform_indices = @transform_9, window_bounds = array<i64: 1, 8, 32>}, {transform_indices = @transform_10, window_bounds = array<i64: 1, 4, 8, 8>}]} {
    %c0 = arith.constant 0 : index
    %c0_0 = arith.constant 0 : index
    %c0_1 = arith.constant 0 : index
    %0 = vector.load %arg1[%c0, %c0_0, %c0_1] : memref<1x8x32xbf16, #tpu.memory_space<vmem>>, vector<1x8x32xbf16>
    %1 = vector.shape_cast %0 : vector<1x8x32xbf16> to vector<8x32xbf16>
    %c0_2 = arith.constant 0 : index
    %c0_3 = arith.constant 0 : index
    %2 = vector.load %arg2[%c0_2, %c0_3] : memref<32x32xbf16, #tpu.memory_space<vmem>>, vector<32x32xbf16>
    %cst = arith.constant dense<0.000000e+00> : vector<8x32xf32>
    %3 = tpu.matmul %1, %2, %cst {dimension_numbers = #tpu.dot_dimension_numbers<[1], [0], [0], [1], [0, 0, 1, 1], [], []>} : vector<8x32xbf16>, vector<32x32xbf16>, vector<8x32xf32> -> vector<8x32xf32>
    %c0_4 = arith.constant 0 : index
    %c0_5 = arith.constant 0 : index
    %4 = vector.load %arg3[%c0_4, %c0_5] : memref<1x32xf32, #tpu.memory_space<vmem>>, vector<1x32xf32>
    %5 = vector.broadcast %4 : vector<1x32xf32> to vector<8x32xf32>
    %6 = arith.addf %3, %5 : vector<8x32xf32>
    %c0_6 = arith.constant 0 : index
    %c0_7 = arith.constant 0 : index
    %7 = vector.load %arg4[%c0_6, %c0_7] : memref<32x32xbf16, #tpu.memory_space<vmem>>, vector<32x32xbf16>
    %cst_8 = arith.constant dense<0.000000e+00> : vector<8x32xf32>
    %8 = tpu.matmul %1, %7, %cst_8 {dimension_numbers = #tpu.dot_dimension_numbers<[1], [0], [0], [1], [0, 0, 1, 1], [], []>} : vector<8x32xbf16>, vector<32x32xbf16>, vector<8x32xf32> -> vector<8x32xf32>
    %c0_9 = arith.constant 0 : index
    %c0_10 = arith.constant 0 : index
    %9 = vector.load %arg5[%c0_9, %c0_10] : memref<1x32xf32, #tpu.memory_space<vmem>>, vector<1x32xf32>
    %10 = vector.broadcast %9 : vector<1x32xf32> to vector<8x32xf32>
    %11 = arith.addf %8, %10 : vector<8x32xf32>
    %c0_11 = arith.constant 0 : index
    %c0_12 = arith.constant 0 : index
    %12 = vector.load %arg6[%c0_11, %c0_12] : memref<32x32xbf16, #tpu.memory_space<vmem>>, vector<32x32xbf16>
    %cst_13 = arith.constant dense<0.000000e+00> : vector<8x32xf32>
    %13 = tpu.matmul %1, %12, %cst_13 {dimension_numbers = #tpu.dot_dimension_numbers<[1], [0], [0], [1], [0, 0, 1, 1], [], []>} : vector<8x32xbf16>, vector<32x32xbf16>, vector<8x32xf32> -> vector<8x32xf32>
    %c0_14 = arith.constant 0 : index
    %c0_15 = arith.constant 0 : index
    %14 = vector.load %arg7[%c0_14, %c0_15] : memref<1x32xf32, #tpu.memory_space<vmem>>, vector<1x32xf32>
    %15 = vector.broadcast %14 : vector<1x32xf32> to vector<8x32xf32>
    %16 = arith.addf %13, %15 : vector<8x32xf32>
    %cst_16 = arith.constant 0.353553385 : f32
    %17 = vector.broadcast %cst_16 : f32 to vector<8x32xf32>
    %18 = arith.mulf %6, %17 : vector<8x32xf32>
    %19 = arith.truncf %18 : vector<8x32xf32> to vector<8x32xbf16>
    %20 = arith.truncf %11 : vector<8x32xf32> to vector<8x32xbf16>
    %21 = arith.truncf %16 : vector<8x32xf32> to vector<8x32xbf16>
    %22 = vector.extract_strided_slice %19 {offsets = [0, 0], sizes = [8, 8], strides = [1, 1]} : vector<8x32xbf16> to vector<8x8xbf16>
    %23 = vector.extract_strided_slice %19 {offsets = [0, 8], sizes = [8, 8], strides = [1, 1]} : vector<8x32xbf16> to vector<8x8xbf16>
    %24 = vector.extract_strided_slice %19 {offsets = [0, 16], sizes = [8, 8], strides = [1, 1]} : vector<8x32xbf16> to vector<8x8xbf16>
    %25 = vector.extract_strided_slice %19 {offsets = [0, 24], sizes = [8, 8], strides = [1, 1]} : vector<8x32xbf16> to vector<8x8xbf16>
    %26 = vector.shape_cast %22 : vector<8x8xbf16> to vector<1x8x8xbf16>
    %27 = vector.shape_cast %23 : vector<8x8xbf16> to vector<1x8x8xbf16>
    %28 = vector.shape_cast %24 : vector<8x8xbf16> to vector<1x8x8xbf16>
    %29 = vector.shape_cast %25 : vector<8x8xbf16> to vector<1x8x8xbf16>
    %30 = tpu.concatenate %26, %27, %28, %29 in 0 : vector<1x8x8xbf16>, vector<1x8x8xbf16>, vector<1x8x8xbf16>, vector<1x8x8xbf16> -> vector<4x8x8xbf16>
    %31 = vector.extract_strided_slice %20 {offsets = [0, 0], sizes = [8, 8], strides = [1, 1]} : vector<8x32xbf16> to vector<8x8xbf16>
    %32 = vector.extract_strided_slice %20 {offsets = [0, 8], sizes = [8, 8], strides = [1, 1]} : vector<8x32xbf16> to vector<8x8xbf16>
    %33 = vector.extract_strided_slice %20 {offsets = [0, 16], sizes = [8, 8], strides = [1, 1]} : vector<8x32xbf16> to vector<8x8xbf16>
    %34 = vector.extract_strided_slice %20 {offsets = [0, 24], sizes = [8, 8], strides = [1, 1]} : vector<8x32xbf16> to vector<8x8xbf16>
    %35 = vector.shape_cast %31 : vector<8x8xbf16> to vector<1x8x8xbf16>
    %36 = vector.shape_cast %32 : vector<8x8xbf16> to vector<1x8x8xbf16>
    %37 = vector.shape_cast %33 : vector<8x8xbf16> to vector<1x8x8xbf16>
    %38 = vector.shape_cast %34 : vector<8x8xbf16> to vector<1x8x8xbf16>
    %39 = tpu.concatenate %35, %36, %37, %38 in 0 : vector<1x8x8xbf16>, vector<1x8x8xbf16>, vector<1x8x8xbf16>, vector<1x8x8xbf16> -> vector<4x8x8xbf16>
    %40 = vector.extract_strided_slice %21 {offsets = [0, 0], sizes = [8, 8], strides = [1, 1]} : vector<8x32xbf16> to vector<8x8xbf16>
    %41 = vector.extract_strided_slice %21 {offsets = [0, 8], sizes = [8, 8], strides = [1, 1]} : vector<8x32xbf16> to vector<8x8xbf16>
    %42 = vector.extract_strided_slice %21 {offsets = [0, 16], sizes = [8, 8], strides = [1, 1]} : vector<8x32xbf16> to vector<8x8xbf16>
    %43 = vector.extract_strided_slice %21 {offsets = [0, 24], sizes = [8, 8], strides = [1, 1]} : vector<8x32xbf16> to vector<8x8xbf16>
    %44 = vector.shape_cast %40 : vector<8x8xbf16> to vector<1x8x8xbf16>
    %45 = vector.shape_cast %41 : vector<8x8xbf16> to vector<1x8x8xbf16>
    %46 = vector.shape_cast %42 : vector<8x8xbf16> to vector<1x8x8xbf16>
    %47 = vector.shape_cast %43 : vector<8x8xbf16> to vector<1x8x8xbf16>
    %48 = tpu.concatenate %44, %45, %46, %47 in 0 : vector<1x8x8xbf16>, vector<1x8x8xbf16>, vector<1x8x8xbf16>, vector<1x8x8xbf16> -> vector<4x8x8xbf16>
    "tpu.trace_start"() <{level = 10 : i32, message = "hqd,hkd->hqk"}> : () -> ()
    %cst_17 = arith.constant dense<0.000000e+00> : vector<4x8x8xf32>
    %49 = tpu.matmul %30, %39, %cst_17 {dimension_numbers = #tpu.dot_dimension_numbers<[2], [2], [1], [1], [0, 0, 0, 1, 1, 1], [0], [0]>} : vector<4x8x8xbf16>, vector<4x8x8xbf16>, vector<4x8x8xf32> -> vector<4x8x8xf32>
    "tpu.trace_stop"() : () -> ()
    %cst_18 = arith.constant dense<0xFF800000> : vector<4x8xf32>
    %50 = vector.multi_reduction <maximumf>, %49, %cst_18 [2] : vector<4x8x8xf32> to vector<4x8xf32>
    %51 = vector.shape_cast %50 : vector<4x8xf32> to vector<4x8x1xf32>
    %52 = vector.broadcast %51 : vector<4x8x1xf32> to vector<4x8x8xf32>
    %53 = arith.subf %49, %52 : vector<4x8x8xf32>
    %54 = math.exp %53 : vector<4x8x8xf32>
    %cst_19 = arith.constant dense<0.000000e+00> : vector<4x8xf32>
    %55 = vector.multi_reduction <add>, %54, %cst_19 [2] : vector<4x8x8xf32> to vector<4x8xf32>
    %56 = vector.shape_cast %55 : vector<4x8xf32> to vector<4x8x1xf32>
    %57 = tpu.reciprocal %56 {approx = true} : vector<4x8x1xf32> -> vector<4x8x1xf32>
    %58 = vector.broadcast %57 : vector<4x8x1xf32> to vector<4x8x8xf32>
    %59 = arith.mulf %54, %58 : vector<4x8x8xf32>
    %c0_20 = arith.constant 0 : index
    %c0_21 = arith.constant 0 : index
    %c0_22 = arith.constant 0 : index
    %c0_23 = arith.constant 0 : index
    %60 = vector.load %arg11[%c0_20, %c0_21, %c0_22, %c0_23] : memref<1x4x8x8xf32, #tpu.memory_space<vmem>>, vector<1x4x8x8xf32>
    %61 = vector.shape_cast %60 : vector<1x4x8x8xf32> to vector<4x8x8xf32>
    %62 = vector.shape_cast %59 : vector<4x8x8xf32> to vector<1x4x8x8xf32>
    tpu.vector_store %arg11[%c0_20, %c0_21, %c0_22, %c0_23], %62 {strides = array<i32>} : memref<1x4x8x8xf32, #tpu.memory_space<vmem>>, vector<1x4x8x8xf32>,
    %63 = arith.truncf %59 : vector<4x8x8xf32> to vector<4x8x8xbf16>
    "tpu.trace_start"() <{level = 10 : i32, message = "hqk,hkd->hqd"}> : () -> ()
    %cst_24 = arith.constant dense<0.000000e+00> : vector<4x8x8xf32>
    %64 = tpu.matmul %63, %48, %cst_24 {dimension_numbers = #tpu.dot_dimension_numbers<[2], [1], [1], [2], [0, 0, 0, 1, 1, 2], [0], [0]>} : vector<4x8x8xbf16>, vector<4x8x8xbf16>, vector<4x8x8xf32> -> vector<4x8x8xf32>
    "tpu.trace_stop"() : () -> ()
    %65 = vector.extract_strided_slice %64 {offsets = [0, 0, 0], sizes = [1, 8, 8], strides = [1, 1, 1]} : vector<4x8x8xf32> to vector<1x8x8xf32>
    %66 = vector.shape_cast %65 : vector<1x8x8xf32> to vector<8x8xf32>
    %67 = arith.truncf %66 : vector<8x8xf32> to vector<8x8xbf16>
    %c0_25 = arith.constant 0 : index
    %c0_26 = arith.constant 0 : index
    %68 = vector.load %arg12[%c0_25, %c0_26] : memref<8x32xbf16, #tpu.memory_space<vmem>>, vector<8x8xbf16>
    tpu.vector_store %arg12[%c0_25, %c0_26], %67 {strides = array<i32>} : memref<8x32xbf16, #tpu.memory_space<vmem>>, vector<8x8xbf16>,
    %69 = vector.extract_strided_slice %64 {offsets = [1, 0, 0], sizes = [1, 8, 8], strides = [1, 1, 1]} : vector<4x8x8xf32> to vector<1x8x8xf32>
    %70 = vector.shape_cast %69 : vector<1x8x8xf32> to vector<8x8xf32>
    %71 = arith.truncf %70 : vector<8x8xf32> to vector<8x8xbf16>
    %c0_27 = arith.constant 0 : index
    %c8 = arith.constant 8 : index
    %72 = vector.load %arg12[%c0_27, %c8] : memref<8x32xbf16, #tpu.memory_space<vmem>>, vector<8x8xbf16>
    tpu.vector_store %arg12[%c0_27, %c8], %71 {strides = array<i32>} : memref<8x32xbf16, #tpu.memory_space<vmem>>, vector<8x8xbf16>,
    %73 = vector.extract_strided_slice %64 {offsets = [2, 0, 0], sizes = [1, 8, 8], strides = [1, 1, 1]} : vector<4x8x8xf32> to vector<1x8x8xf32>
    %74 = vector.shape_cast %73 : vector<1x8x8xf32> to vector<8x8xf32>
    %75 = arith.truncf %74 : vector<8x8xf32> to vector<8x8xbf16>
    %c0_28 = arith.constant 0 : index
    %c16 = arith.constant 16 : index
    %76 = vector.load %arg12[%c0_28, %c16] : memref<8x32xbf16, #tpu.memory_space<vmem>>, vector<8x8xbf16>
    tpu.vector_store %arg12[%c0_28, %c16], %75 {strides = array<i32>} : memref<8x32xbf16, #tpu.memory_space<vmem>>, vector<8x8xbf16>,
    %77 = vector.extract_strided_slice %64 {offsets = [3, 0, 0], sizes = [1, 8, 8], strides = [1, 1, 1]} : vector<4x8x8xf32> to vector<1x8x8xf32>
    %78 = vector.shape_cast %77 : vector<1x8x8xf32> to vector<8x8xf32>
    %79 = arith.truncf %78 : vector<8x8xf32> to vector<8x8xbf16>
    %c0_29 = arith.constant 0 : index
    %c24 = arith.constant 24 : index
    %80 = vector.load %arg12[%c0_29, %c24] : memref<8x32xbf16, #tpu.memory_space<vmem>>, vector<8x8xbf16>
    tpu.vector_store %arg12[%c0_29, %c24], %79 {strides = array<i32>} : memref<8x32xbf16, #tpu.memory_space<vmem>>, vector<8x8xbf16>,
    %c0_30 = arith.constant 0 : index
    %c0_31 = arith.constant 0 : index
    %81 = vector.load %arg12[%c0_30, %c0_31] : memref<8x32xbf16, #tpu.memory_space<vmem>>, vector<8x32xbf16>
    %c0_32 = arith.constant 0 : index
    %c0_33 = arith.constant 0 : index
    %82 = vector.load %arg8[%c0_32, %c0_33] : memref<32x32xbf16, #tpu.memory_space<vmem>>, vector<32x32xbf16>
    %cst_34 = arith.constant dense<0.000000e+00> : vector<8x32xf32>
    %83 = tpu.matmul %81, %82, %cst_34 {dimension_numbers = #tpu.dot_dimension_numbers<[1], [0], [0], [1], [0, 0, 1, 1], [], []>} : vector<8x32xbf16>, vector<32x32xbf16>, vector<8x32xf32> -> vector<8x32xf32>
    %c0_35 = arith.constant 0 : index
    %c0_36 = arith.constant 0 : index
    %84 = vector.load %arg9[%c0_35, %c0_36] : memref<1x32xf32, #tpu.memory_space<vmem>>, vector<1x32xf32>
    %85 = vector.broadcast %84 : vector<1x32xf32> to vector<8x32xf32>
    %86 = arith.addf %83, %85 : vector<8x32xf32>
    %c0_37 = arith.constant 0 : index
    %c0_38 = arith.constant 0 : index
    %c0_39 = arith.constant 0 : index
    %87 = vector.load %arg10[%c0_37, %c0_38, %c0_39] : memref<1x8x32xf32, #tpu.memory_space<vmem>>, vector<1x8x32xf32>
    %88 = vector.shape_cast %87 : vector<1x8x32xf32> to vector<8x32xf32>
    %89 = vector.shape_cast %86 : vector<8x32xf32> to vector<1x8x32xf32>
    tpu.vector_store %arg10[%c0_37, %c0_38, %c0_39], %89 {strides = array<i32>} : memref<1x8x32xf32, #tpu.memory_space<vmem>>, vector<1x8x32xf32>,
    return
  }
  func.func @transform_0(%arg0: i32) -> (i32, i32, i32) {
    %c0_i32 = arith.constant 0 : i32
    %c0_i32_0 = arith.constant 0 : i32
    %c0_i32_1 = arith.constant 0 : i32
    return %arg0, %c0_i32, %c0_i32_0 : i32, i32, i32
  }
  func.func @transform_1(%arg0: i32) -> (i32, i32) {
    %c0_i32 = arith.constant 0 : i32
    %c0_i32_0 = arith.constant 0 : i32
    %c0_i32_1 = arith.constant 0 : i32
    return %c0_i32, %c0_i32_0 : i32, i32
  }
  func.func @transform_2(%arg0: i32) -> (i32, i32) {
    %c0_i32 = arith.constant 0 : i32
    %c0_i32_0 = arith.constant 0 : i32
    %c0_i32_1 = arith.constant 0 : i32
    return %c0_i32, %c0_i32_0 : i32, i32
  }
  func.func @transform_3(%arg0: i32) -> (i32, i32) {
    %c0_i32 = arith.constant 0 : i32
    %c0_i32_0 = arith.constant 0 : i32
    %c0_i32_1 = arith.constant 0 : i32
    return %c0_i32, %c0_i32_0 : i32, i32
  }
  func.func @transform_4(%arg0: i32) -> (i32, i32) {
    %c0_i32 = arith.constant 0 : i32
    %c0_i32_0 = arith.constant 0 : i32
    %c0_i32_1 = arith.constant 0 : i32
    return %c0_i32, %c0_i32_0 : i32, i32
  }
  func.func @transform_5(%arg0: i32) -> (i32, i32) {
    %c0_i32 = arith.constant 0 : i32
    %c0_i32_0 = arith.constant 0 : i32
    %c0_i32_1 = arith.constant 0 : i32
    return %c0_i32, %c0_i32_0 : i32, i32
  }
  func.func @transform_6(%arg0: i32) -> (i32, i32) {
    %c0_i32 = arith.constant 0 : i32
    %c0_i32_0 = arith.constant 0 : i32
    %c0_i32_1 = arith.constant 0 : i32
    return %c0_i32, %c0_i32_0 : i32, i32
  }
  func.func @transform_7(%arg0: i32) -> (i32, i32) {
    %c0_i32 = arith.constant 0 : i32
    %c0_i32_0 = arith.constant 0 : i32
    %c0_i32_1 = arith.constant 0 : i32
    return %c0_i32, %c0_i32_0 : i32, i32
  }
  func.func @transform_8(%arg0: i32) -> (i32, i32) {
    %c0_i32 = arith.constant 0 : i32
    %c0_i32_0 = arith.constant 0 : i32
    %c0_i32_1 = arith.constant 0 : i32
    return %c0_i32, %c0_i32_0 : i32, i32
  }
  func.func @transform_9(%arg0: i32) -> (i32, i32, i32) {
    %c0_i32 = arith.constant 0 : i32
    %c0_i32_0 = arith.constant 0 : i32
    %c0_i32_1 = arith.constant 0 : i32
    return %arg0, %c0_i32, %c0_i32_0 : i32, i32, i32
  }
  func.func @transform_10(%arg0: i32) -> (i32, i32, i32, i32) {
    %c0_i32 = arith.constant 0 : i32
    %c0_i32_0 = arith.constant 0 : i32
    %c0_i32_1 = arith.constant 0 : i32
    %c0_i32_2 = arith.constant 0 : i32
    return %arg0, %c0_i32, %c0_i32_0, %c0_i32_1 : i32, i32, i32, i32
  }
}

</mosaic_0001>

<bundles_post_ra>
// kernel: tpu_custom_call.1
= control target key start
LH: loop header
LB: loop body
LE: loop exit
PB: predicated region body
PF: predicated region fallthrough
CT: control target
= control target key end

     0   :  { %s1802_s0 = inlined_call_operand.hbm [shape: bf16[2,8,32], index: 0, kind: input, shape index: {}]   ;;  %s1803_s1 = inlined_call_operand.hbm [shape: bf16[32,32], index: 1, kind: input, shape index: {}]   ;;  %s1804_s2 = inlined_call_operand.vmem [shape: f32[1,32], index: 2, kind: input, shape index: {}]   ;;  %s1805_s3 = inlined_call_operand.hbm [shape: bf16[32,32], index: 3, kind: input, shape index: {}]   ;;  %s1806_s4 = inlined_call_operand.vmem [shape: f32[1,32], index: 4, kind: input, shape index: {}]   ;;  %s1807_s5 = inlined_call_operand.hbm [shape: bf16[32,32], index: 5, kind: input, shape index: {}]   ;;  %s1808_s6 = inlined_call_operand.vmem [shape: f32[1,32], index: 6, kind: input, shape index: {}]   ;;  %s1809_s7 = inlined_call_operand.hbm [shape: bf16[32,32], index: 7, kind: input, shape index: {}]   ;;  %s1810_s8 = inlined_call_operand.vmem [shape: f32[1,32], index: 8, kind: input, shape index: {}]   ;;  %s1811_s9 = inlined_call_operand.hbm [shape: f32[2,8,32], index: 9, kind: output, shape index: {0}]   ;;  %s1812_s10 = inlined_call_operand.hbm [shape: f32[2,4,8,8], index: 10, kind: output, shape index: {1}]  }
   0x1   :  { %1814 = sst [smem:[#allocation21_spill]] %s1803_s1 }
   0x2   :  { %1815 = sst [smem:[#allocation22_spill]] %s1805_s3 }
   0x3   :  { %1816 = sst [smem:[#allocation23_spill]] %s1807_s5 }
   0x4   :  { %1817 = sst [smem:[#allocation24_spill]] %s1809_s7 }
   0x5   :  { %16 = vsyncpa [#allocation4], 0 }
   0x6   :  { %18 = vsyncpa [#allocation4 + $0x1], 0 }
   0x7   :  { %19 = vsyncpa [#allocation7], 0 }
   0x8   :  { %20 = vsyncpa [#allocation10], 0 }
   0x9   :  { %21 = vsyncpa [#allocation5], 0 }
   0xa   :  { %23 = vsyncpa [#allocation5 + $0x1], 0 }
   0xb   :  { %24 = vsyncpa [#allocation14], 0 }
   0xc   :  { %26 = vsyncpa [#allocation14 + $0x1], 0  ;;  %s1555_s13 = smov 0   ;;  %s1557_s14 = smov 0  }
   0xd   :  { %s1559_s15 = smov 0   ;;  %s1561_s16 = smov 0  }
   0xe LB: > { %s1818_s1 = sld [smem:[#allocation21_spill]]  ;;  %s1579_s20 = sadd.s32 4294967295, %s1485_s16   ;;  %s1485_s16 = sphi %s1561_s16, %s1836_s16   ;;  %s1481_s15 = sphi %s1559_s15, %s1835_s15   ;;  %s1477_s14 = sphi %s1557_s14, %s1834_s14   ;;  %s1473_s13 = sphi %s1555_s13, %s1833_s13  }
   0xf   : > { %p1032_p0 = scmp.ge.s32.totalorder %s1485_s16, 1  ;;  %p53_p1 = scmp.eq.s32.totalorder %s1579_s20, 0 }
  0x10   : > { %p283_p2 = scmp.lt.s32.totalorder %s1485_s16, 3  ;;  %s1487_s22 = smov [#allocation6]  }
  0x11   : > { %s296_s23 = sshll.u32 %s1487_s22, 4  ;;  %s1820_s5 = sld [smem:[#allocation23_spill]]  ;;  %s297_s23 = int_to_ptr.vmem [resolvable:$true] %s296_s23 }
  0x12   : > { %p1584_p3 = pnand %p1032_p0, %p283_p2  ;;  %s1822_s3 = sld [smem:[#allocation22_spill]] }
  0x13   : > { %s1488_s11 = smov [#allocation9]   ;;  %s1489_s17 = smov 64  }
  0x14   : > { %s294_s19 = sshll.u32 %s1818_s1, 4  ;;  %p1130_p4 = pneg %p1584_p3  ;;  %s295_s19 = int_to_ptr.hbm [resolvable:$true] %s294_s19 }
  0x15   : > { %s330_s12 = sshll.u32 %s1488_s11, 4  ;;  %s1490_s18 = smov 4   ;;  %s331_s12 = int_to_ptr.vmem [resolvable:$true] %s330_s12 }
  0x16   : > { %p1596_p6 = pnand %p1130_p4, %p53_p1  ;;  %s1823_s7 = sld [smem:[#allocation24_spill]] }
  0x17   : > { %s328_s26 = sshll.u32 %s1820_s5, 4  ;;  %s1491_s28 = smov [#allocation8]   ;;  %s329_s26 = int_to_ptr.hbm [resolvable:$true] %s328_s26 }
  0x18   : > { %s311_s30 = sshll.u32 %s1822_s3, 4  ;;  %s313_s29 = sshll.u32 %s1491_s28, 4  ;;  %s312_s30 = int_to_ptr.hbm [resolvable:$true] %s311_s30  ;;  %s314_s29 = int_to_ptr.vmem [resolvable:$true] %s313_s29 }
  0x19   : > { %1133 = dma.hbm_to_vmem [thread:$0]  (!%p1596_p6), %s295_s19, 256, %s297_s23, [#allocation7], %s1489_s17, %s1489_s17, %s1490_s18  }
  0x1a   : > { %1139 = dma.hbm_to_vmem [thread:$0]  (!%p1596_p6), %s329_s26, 256, %s331_s12, [#allocation10], %s1489_s17, %s1489_s17, %s1490_s18  }
  0x1b   : > { %1136 = dma.hbm_to_vmem [thread:$0]  (!%p1596_p6), %s312_s30, 256, %s314_s29, [#allocation7], %s1489_s17, %s1489_s17, %s1490_s18  }
  0x1c   : > { %s345_s25 = sshll.u32 %s1823_s7, 4  ;;  %s1492_s19 = smov [#allocation11]   ;;  %s346_s25 = int_to_ptr.hbm [resolvable:$true] %s345_s25 }
  0x1d   : > { %s347_s23 = sshll.u32 %s1492_s19, 4  ;;  %s1031_s26 = sadd.s32 4294967294, %s1485_s16   ;;  %s348_s23 = int_to_ptr.vmem [resolvable:$true] %s347_s23 }
  0x1e   : > { %1142 = dma.hbm_to_vmem [thread:$0]  (!%p1596_p6), %s346_s25, 256, %s348_s23, [#allocation10], %s1489_s17, %s1489_s17, %s1490_s18  }
  0x1f   : > { %s1616_s11 = sadd.s32 1, %s1485_s16   ;;  %s39_s22 = sadd.s32 1, %s1481_s15 }
  0x20   : > { %s36_s12 = ssub.s32 %s1485_s16, %s1616_s11  ;;  %p46_p8 = scmp.ne.s32.totalorder %s1481_s15, %s1477_s14 }
  0x21   : > { %p37_p7 = scmp.eq.s32.totalorder %s36_s12, 0  ;;  %p47_p9 = scmp.eq.s32.totalorder %s1485_s16, 0 }
  0x22   : > { %p52_p10 = scmp.ne.s32.totalorder %s1477_s14, %s1473_s13  ;;  %p244_p13 = scmp.eq.s32.totalorder %s1579_s20, 1 }
  0x23   : > { %s1627_s30 = scalar_select %p37_p7, %s1481_s15, %s39_s22  }
  0x24   : > { %p1629_p11 = por %p47_p9, %p46_p8  ;;  %p1635_p12 = por %p53_p1, %p52_p10 }
  0x25   : > { %1824 = sst [smem:[#allocation20_spill]] %s1627_s30  ;;  %p250_p0 = scmp.eq.s32.totalorder %s1031_s26, 1 }
  0x26   : > { %p1158_p2 = scmp.lt.s32.totalorder %s1485_s16, 2  ;;  %s364_s17 = sand.u32 1, %s1481_s15  }
  0x27   : > { %p1642_p4 = por %p244_p13, %p46_p8  ;;  %p1646_p6 = por %p250_p0, %p52_p10 }
  0x28   : > { %s1038_s28 = sshll.u32 %s364_s17, 2  ;;  %s1039_s29 = sshll.u32 %s1485_s16, 2 }
  0x29   : > { %s372_s12 = scalar_lea.hbm %s1802_s0, %s1039_s29  ;;  %s368_s22 = scalar_lea.vmem [#allocation3], %s1038_s28 }
  0x2a   : > { %s376_s1 = sshll.u32 %s368_s22, 4  ;;  %s374_s3 = sshll.u32 %s372_s12, 4  ;;  %s377_s1 = int_to_ptr.vmem [resolvable:$true] %s376_s1  ;;  %s375_s3 = int_to_ptr.hbm [resolvable:$true] %s374_s3 }
  0x2b   : > { %p1656_p7 = pnand %p1158_p2, %p1629_p11  ;;  %s365_s5 = scalar_lea.sflag [#allocation4], %s364_s17 }
  0x2c   : > { %s1349_s7 = sshra.s32 %s375_s3, 4  ;;  %s1356_s19 = scalar_lea.hbm %s1802_s0, 8  ;;  %s1350_s7 = int_to_ptr.hbm [resolvable:$true] %s1349_s7 }
  0x2d   : > { %s1351_s30 = scalar_lea.hbm %s1350_s7, 4  ;;  %p1353_p9 = pneg %p1656_p7 }
  0x2e   : > { %p1352_p8 = scmp.ne.s32.totalorder %s1350_s7, %s1351_s30  ;;  %p1357_p11 = scmp.lt.s32.totalorder %s1350_s7, %s1802_s0 }
  0x2f   : > { %p1358_p0 = scmp.lt.s32.totalorder %s1356_s19, %s1351_s30 }
  0x30   : > { %p1354_p10 = pnand %p1353_p9, %p1352_p8 }
  0x31   : > { %p1359_p2 = por %p1358_p0, %p1357_p11 }
  0x32   : > { %p1355_p13 = pneg %p1354_p10 }
  0x34   : > { %p1360_p5 = pnand %p1359_p2, %p1355_p13 }
  0x36   : > { %1363 = shalt.err (!%p1360_p5)
}
  0x37   : > { %1146 = dma.hbm_to_vmem [thread:$0]  (!%p1656_p7), %s375_s3, 64, %s377_s1, %s365_s5  }
  0x38   : > { %385 = sbr.rel (%p1584_p3) target bundleno = 1125 (0x465), region = 56  ;;  %s1673_s17 = sand.u32 (!%p1584_p3), 1, %s1477_s14  }
  0x39   : > { %s1041_s12 = sshll.u32 (!%p1584_p3), %s1673_s17, 2  ;;  %s388_s22 = scalar_lea.sflag (!%p1584_p3), [#allocation4], %s1673_s17 }
  0x3a   : > { %s391_s28 = scalar_lea.vmem (!%p1584_p3), [#allocation3], %s1041_s12 }
  0x3d   : > { %1452 = dma.done.wait (%p1635_p12), %s388_s22, 64  }
  0x3e   : > { %1454 = vsyncadd (%p1635_p12), %s388_s22, 4294967232 }
  0x3f   : > { %1456 = dma.done.wait (%p53_p1), [#allocation7], 512  }
  0x40   : > { %1458 = vsyncadd (%p53_p1), [#allocation7], 4294966784 }
  0x41   : > { %1460 = dma.done.wait (%p53_p1), [#allocation10], 512  }
  0x42   : > { %1462 = vsyncadd (%p53_p1), [#allocation10], 4294966784  ;;  %v1100_v0 = vld [vmem:[#allocation6 + $0x8] sm:$0xff]  ;;  %v1102_v1 = vld [vmem:[#allocation8 + $0x8] sm:$0xff]  ;;  %vm476_vm0 = vcmask 261120   ;;  %vm584_vm1 = vcmask 64512  }
  0x43   : > { %v1099_v2 = vld [vmem:[#allocation6] sm:$0xff]  ;;  %486 = vmatpush.bf16.msra.mxu0 %v1100_v0  ;;  %519 = vmatpush.bf16.msra.mxu1 %v1102_v1  ;;  %v1101_v3 = vld [vmem:[#allocation8] sm:$0xff]  ;;  %v455_v4 = vld [vmem:[%s391_s28] sm:$0xf]  ;;  %s1493_s21 = smov 120   ;;  %s1494_s30 = smov 104  }
  0x44   : > { %v1209_v5 = vld [vmem:[%s1804_s2] ss:$0 sm:$0xff]  ;;  %s1495_s27 = smov 112   ;;  %v1104_v17 = vld [vmem:[#allocation9 + $0x8] sm:$0xff]  ;;  %v1103_v18 = vld [vmem:[#allocation9] sm:$0xff]  ;;  %vm716_vm2 = vcmask 1043456  }
  0x45   : > { %v1210_v6 = vld [vmem:[%s1806_s4] ss:$0 sm:$0xff]  ;;  %552 = vmatpush.bf16.msra.mxu2 %v1104_v17  ;;  %s1047_s19 = sshll.u32 %s1673_s17, 5  ;;  %s1496_s24 = smov 16   ;;  %vm791_vm3 = vcmask 60416   ;;  %vm798_vm4 = vcmask 126016  }
  0x46   : > { %v1211_v30 = vld [vmem:[%s1808_s6] ss:$0 sm:$0xff]  ;;  %s1728_s23 = scalar_lea.vmem [#allocation13], %s1047_s19  ;;  %s1813_s12 = smov 8   ;;  %vm805_vm5 = vcmask 191616   ;;  %vm812_vm6 = vcmask 257216  }
  0x47   : > { %487 = vmatpush.bf16.msra.mxu0 %v1099_v2  ;;  %520 = vmatpush.bf16.msra.mxu1 %v1101_v3  ;;  %s1498_s22 = smov 24   ;;  %s1107_s28 = sshll.u32 %s1579_s20, 5 }
  0x48   : > { %s883_s5 = scalar_lea.hbm %s1812_s10, %s1107_s28  ;;  %s884_s7 = sshll.u32 %s1728_s23, 4  ;;  %s885_s7 = int_to_ptr.vmem [resolvable:$true] %s884_s7 }
  0x49   : > { %553 = vmatpush.bf16.msra.mxu2 %v1103_v18 }
  0x4a   : > { %1056 = vmatmul.msk.bf16.vlgmr.msra.gmra.mxu0 %vm476_vm0, %v455_v4  ;;  %1065 = vmatmul.msk.bf16.vlgmr.msra.gmra.mxu1 %vm476_vm0, %v455_v4 }
  0x4c   : > { %1074 = vmatmul.msk.bf16.vlgmr.msra.gmra.mxu2 %vm476_vm0, %v455_v4 }
  0xc7   : > { %v489_v7 = vpop.f32.mrf.mxu0  ;;  %v522_v8 = vpop.f32.mrf.mxu1 }
  0xc8   : > { %v490_v9 = vadd.f32 %v1209_v5, %v489_v7  ;;  %v523_v10 = vadd.f32 %v1210_v6, %v522_v8 }
  0xca   : > { %v559_v11 = vmul.f32 0.35355338, %v490_v9  ;;  %v561_v12 = vpack.c.bf16 %v523_v10, %v523_v10 }
  0xcc   : > { %v560_v13 = vpack.c.bf16 %v559_v11, %v559_v11  ;;  %571 = vrot.lane.b32.xlu1 %v561_v12, %s1493_s21  ;;  %575 = vrot.lane.b32.xlu0 %v561_v12, %s1494_s30  ;;  %v589_v14 = vsel %vm584_vm1, %v561_v12, 0 }
  0xcd   : > { %598 = vmatpush.bf16.xpose.msra.mxu3 %v589_v14 }
  0xce   : > { %564 = vrot.lane.b32.xlu2 %v560_v13, %s1493_s21 }
  0xcf   : > { %v491_v15 = vpop.f32.mrf.mxu0  ;;  %v524_v16 = vpop.f32.mrf.mxu1 }
  0xd0   : > { %v555_v31 = vpop.f32.mrf.mxu2 }
  0xd1   : > { %v556_v32 = vadd.f32 %v1211_v30, %v555_v31 }
  0xd3   : > { %v562_v33 = vpack.c.bf16 %v556_v32, %v556_v32 }
  0xd4   : > { %573 = vrot.lane.b32.xlu1 %v561_v12, %s1495_s27  ;;  %568 = vrot.lane.b32.xlu0 %v560_v13, %s1494_s30 }
  0xd5   : > { %1075 = vmatmul.msk.bf16.vlgmr.msra.gmra.mxu3 %vm584_vm1, %v560_v13  ;;  %v718_v34 = vsel %vm716_vm2, %v562_v33, 0 }
  0xd6   : > { %566 = vrot.lane.b32.xlu2 %v560_v13, %s1495_s27  ;;  %727 = vmatpush.bf16.msrb.mxu3 %v718_v34 }
  0xd8   : > { %v557_v35 = vpop.f32.mrf.mxu2 }
 0x128   : > { %v565_v23 = vpop.permute.xlu2 %564 }
 0x130   : > { %v567_v27 = vpop.permute.xlu2 %566 }
 0x13e   : > { %v572_v19 = vpop.permute.xlu1 %571  ;;  %v576_v20 = vpop.permute.xlu0 %575 }
 0x13f   : > { %v608_v21 = vsel %vm584_vm1, %v572_v19, 0  ;;  %v646_v22 = vsel %vm584_vm1, %v576_v20, 0 }
 0x140   : > { %617 = vmatpush.bf16.xpose.msrb.mxu0 %v608_v21  ;;  %655 = vmatpush.bf16.xpose.msrb.mxu2 %v646_v22 }
 0x146   : > { %v574_v24 = vpop.permute.xlu1 %573  ;;  %v569_v25 = vpop.permute.xlu0 %568 }
 0x147   : > { %1076 = vmatmul.msk.bf16.vlgmr.msrb.gmra.mxu0 %vm584_vm1, %v565_v23  ;;  %1078 = vmatmul.msk.bf16.vlgmr.msrb.gmra.mxu2 %vm584_vm1, %v569_v25  ;;  %v627_v26 = vsel %vm584_vm1, %v574_v24, 0 }
 0x148   : > { %636 = vmatpush.bf16.xpose.msrb.mxu1 %v627_v26 }
 0x14f   : > { %1077 = vmatmul.msk.bf16.vlgmr.msrb.gmra.mxu1 %vm584_vm1, %v567_v27 }
 0x158   : > { %v600_v28 = vpop.f32.mrf.mxu3 }
 0x159   : > { %v661_v45 = vsel %vm584_vm1, %v600_v28, -inf }
 0x160   : > { %v602_v29 = vpop.f32.mrf.mxu3 }
 0x1c4   : > { %v619_v36 = vpop.f32.mrf.mxu0 }
 0x1c5   : > { %v664_v37 = vsel %vm584_vm1, %v619_v36, -inf }
 0x1c6   : > { %665 = vmax.xlane.f32.xlu1 %v664_v37  ;;  %v1105_v37 = vld [vmem:[#allocation11] sm:$0xff] }
 0x1ca   : > { %v657_v38 = vpop.f32.mrf.mxu2 }
 0x1cb   : > { %v670_v39 = vsel %vm584_vm1, %v657_v38, -inf }
 0x1cc   : > { %v621_v40 = vpop.f32.mrf.mxu0  ;;  %v638_v41 = vpop.f32.mrf.mxu1  ;;  %671 = vmax.xlane.f32.xlu0 %v670_v39 }
 0x1cd   : > { %v667_v42 = vsel %vm584_vm1, %v638_v41, -inf }
 0x1ce   : > { %668 = vmax.xlane.f32.xlu2 %v667_v42 }
 0x1d2   : > { %v659_v43 = vpop.f32.mrf.mxu2 }
 0x1d4   : > { %v640_v44 = vpop.f32.mrf.mxu1 }
 0x1d6   : > { %662 = vmax.xlane.f32.xlu2 %v661_v45 }
 0x239   : > { %v666_v46 = vpop.xlane.xlu1 %665 }
 0x23a   : > { %v674_v47 = vsub.f32 %v619_v36, %v666_v46  ;;  %v1106_v36 = vld [vmem:[#allocation11 + $0x8] sm:$0xff] }
 0x23b   : > { %844 = vmatpush.bf16.msra.mxu3 %v1106_v36 }
 0x23c   : > { %v679_v48 = vmul.f32 1.442695, %v674_v47 }
 0x23e   : > { %1213 = vpow2.f32 %v679_v48 }
 0x23f   : > { %v672_v49 = vpop.xlane.xlu0 %671  ;;  %845 = vmatpush.bf16.msra.mxu3 %v1105_v37 }
 0x240   : > { %v676_v50 = vsub.f32 %v657_v38, %v672_v49 }
 0x241   : > { %v669_v51 = vpop.xlane.xlu2 %668 }
 0x242   : > { %v683_v52 = vmul.f32 1.442695, %v676_v50  ;;  %v675_v53 = vsub.f32 %v638_v41, %v669_v51 }
 0x244   : > { %v1214_v54 = vpop.eup %1213  ;;  %1215 = vpow2.f32 %v683_v52  ;;  %v681_v55 = vmul.f32 1.442695, %v675_v53 }
 0x245   : > { %v688_v56 = vsel %vm584_vm1, %v1214_v54, 0.0 }
 0x246   : > { %1217 = vpow2.f32 %v681_v55  ;;  %689 = vadd.xlane.f32.xlu1 %v688_v56 }
 0x249   : > { %v663_v61 = vpop.xlane.xlu2 %662 }
 0x24a   : > { %v1216_v57 = vpop.eup %1215  ;;  %v673_v62 = vsub.f32 %v600_v28, %v663_v61 }
 0x24b   : > { %v694_v58 = vsel %vm584_vm1, %v1216_v57, 0.0 }
 0x24c   : > { %v1218_v59 = vpop.eup %1217  ;;  %695 = vadd.xlane.f32.xlu0 %v694_v58  ;;  %v677_v63 = vmul.f32 1.442695, %v673_v62 }
 0x24d   : > { %v691_v60 = vsel %vm584_vm1, %v1218_v59, 0.0 }
 0x24e   : > { %692 = vadd.xlane.f32.xlu2 %v691_v60  ;;  %1219 = vpow2.f32 %v677_v63 }
 0x254   : > { %v1220_v0 = vpop.eup %1219 }
 0x255   : > { %v685_v1 = vsel %vm584_vm1, %v1220_v0, 0.0 }
 0x25f   : > { %578 = vrot.lane.b32.xlu1 %v562_v33, %s1493_s21  ;;  %s886_s21 = sshll.u32 %s883_s5, 4  ;;  %s887_s21 = int_to_ptr.hbm [resolvable:$true] %s886_s21 }
 0x260   : > { %582 = vrot.lane.b32.xlu0 %v562_v33, %s1494_s30  ;;  %s858_s30 = scalar_lea.sflag [#allocation14], %s1673_s17 }
 0x266   : > { %580 = vrot.lane.b32.xlu2 %v562_v33, %s1495_s27  ;;  %s1393_s27 = sshra.s32 %s887_s21, 4  ;;  %s1394_s27 = int_to_ptr.hbm [resolvable:$true] %s1393_s27 }
 0x267   : > { %s1395_s26 = scalar_lea.hbm %s1394_s27, 32  ;;  %p1400_p12 = scmp.lt.s32.totalorder %s1394_s27, %s1812_s10 }
 0x268   : > { %p1396_p1 = scmp.ne.s32.totalorder %s1394_s27, %s1395_s26 }
 0x26a   : > { %p1397_p3 = pnand %p1396_p1, %p1642_p4 }
 0x26c   : > { %p1398_p5 = pneg %p1397_p3 }
 0x28a   : > { %686 = vadd.xlane.f32.xlu0 %v685_v1 }
 0x2b9   : > { %v690_v2 = vpop.xlane.xlu1 %689 }
 0x2ba   : > { %1221 = vrcp.f32 %v690_v2 }
 0x2bf   : > { %v696_v3 = vpop.xlane.xlu0 %695 }
 0x2c0   : > { %v1222_v4 = vpop.eup %1221  ;;  %1223 = vrcp.f32 %v696_v3 }
 0x2c1   : > { %v702_v5 = vmul.f32 %v1222_v4, %v1214_v54  ;;  %v693_v6 = vpop.xlane.xlu2 %692 }
 0x2c2   : > { %1225 = vrcp.f32 %v693_v6 }
 0x2c3   : > { %706 = vst.msk [vmem:[%s1728_s23 + $0x8] sm:$0xff] %vm584_vm1, %v702_v5  ;;  %v710_v18 = vpack.c.bf16 %v702_v5, %v702_v5 }
 0x2c6   : > { %v1224_v7 = vpop.eup %1223 }
 0x2c7   : > { %v704_v8 = vmul.f32 %v1224_v7, %v1216_v57 }
 0x2c8   : > { %v1226_v9 = vpop.eup %1225 }
 0x2c9   : > { %708 = vst.msk [vmem:[%s1728_s23 + $0x18] sm:$0xff] %vm584_vm1, %v704_v8  ;;  %v703_v10 = vmul.f32 %v1226_v9, %v1218_v59  ;;  %v581_v11 = vpop.permute.xlu2 %580  ;;  %v712_v19 = vpack.c.bf16 %v704_v8, %v704_v8 }
 0x2ca   : > { %v756_v12 = vsel %vm716_vm2, %v581_v11, 0 }
 0x2cb   : > { %707 = vst.msk [vmem:[%s1728_s23 + $0x10] sm:$0xff] %vm584_vm1, %v703_v10  ;;  %v711_v13 = vpack.c.bf16 %v703_v10, %v703_v10  ;;  %765 = vmatpush.bf16.msra.mxu1 %v756_v12 }
 0x2ce   : > { %1081 = vmatmul.msk.bf16.vlgmr.msra.gmra.mxu1 %vm584_vm1, %v711_v13 }
 0x2d1   : > { %v579_v14 = vpop.permute.xlu1 %578 }
 0x2d2   : > { %v737_v15 = vsel %vm716_vm2, %v579_v14, 0  ;;  %v583_v16 = vpop.permute.xlu0 %582 }
 0x2d3   : > { %v775_v17 = vsel %vm716_vm2, %v583_v16, 0  ;;  %746 = vmatpush.bf16.msra.mxu0 %v737_v15 }
 0x2d4   : > { %784 = vmatpush.bf16.msra.mxu2 %v775_v17 }
 0x2d6   : > { %1080 = vmatmul.msk.bf16.vlgmr.msra.gmra.mxu0 %vm584_vm1, %v710_v18 }
 0x2d7   : > { %1082 = vmatmul.msk.bf16.vlgmr.msra.gmra.mxu2 %vm584_vm1, %v712_v19 }
 0x2fd   : > { %v687_v20 = vpop.xlane.xlu0 %686 }
 0x2fe   : > { %1227 = vrcp.f32 %v687_v20 }
 0x304   : > { %v1228_v21 = vpop.eup %1227 }
 0x305   : > { %v701_v22 = vmul.f32 %v1228_v21, %v1220_v0 }
 0x307   : > { %705 = vst.msk [vmem:[%s1728_s23] sm:$0xff] %vm584_vm1, %v701_v22  ;;  %v709_v23 = vpack.c.bf16 %v701_v22, %v701_v22 }
 0x309   : > { %1079 = vmatmul.msk.bf16.vlgmr.msrb.gmra.mxu3 %vm584_vm1, %v709_v23 }
 0x34b   : > { %v767_v24 = vpop.f32.mrf.mxu1 }
 0x34c   : > { %v800_v25 = vpack.c.bf16 %v767_v24, %v767_v24 }
 0x34e   : > { %802 = vrot.lane.b32.xlu2 %v800_v25, %s1496_s24  ;;  %s1399_s24 = scalar_lea.hbm %s1812_s10, 64 }
 0x34f   : > { %p1401_p7 = scmp.lt.s32.totalorder %s1399_s24, %s1395_s26 }
 0x351   : > { %p1402_p8 = por %p1401_p7, %p1400_p12 }
 0x353   : > { %v748_v26 = vpop.f32.mrf.mxu0  ;;  %v769_v27 = vpop.f32.mrf.mxu1  ;;  %p1403_p9 = pnand %p1402_p8, %p1398_p5 }
 0x354   : > { %v793_v28 = vpack.c.bf16 %v748_v26, %v748_v26 }
 0x356   : > { %795 = vrot.lane.b32.xlu1 %v793_v28, %s1813_s12 }
 0x35a   : > { %v786_v29 = vpop.f32.mrf.mxu2 }
 0x35b   : > { %v807_v30 = vpack.c.bf16 %v786_v29, %v786_v29  ;;  %v750_v31 = vpop.f32.mrf.mxu0 }
 0x35e   : > { %809 = vrot.lane.b32.xlu1 %v807_v30, %s1498_s22 }
 0x362   : > { %v788_v32 = vpop.f32.mrf.mxu2 }
 0x38c   : > { %v729_v33 = vpop.f32.mrf.mxu3 }
 0x38d   : > { %v790_v34 = vpack.c.bf16 %v729_v33, %v729_v33 }
 0x38f   : > { %792 = vst.msk [vmem:[#allocation2] sm:$0xf] %vm791_vm3, %v790_v34 }
 0x394   : > { %v731_v35 = vpop.f32.mrf.mxu3 }
 0x3a8   : > { %v803_v39 = vpop.permute.xlu2 %802 }
 0x3c8   : > { %v796_v38 = vpop.permute.xlu1 %795 }
 0x3c9   : > { %799 = vst.msk [vmem:[#allocation2] sm:$0xf] %vm798_vm4, %v796_v38 }
 0x3ca   : > { %806 = vst.msk [vmem:[#allocation2] sm:$0xf] %vm805_vm5, %v803_v39 }
 0x3d0   : > { %v810_v40 = vpop.permute.xlu1 %809 }
 0x3d1   : > { %813 = vst.msk [vmem:[#allocation2] sm:$0xf] %vm812_vm6, %v810_v40 }
 0x3d8   : > { %v814_v41 = vld [vmem:[#allocation2] sm:$0xf] }
 0x3d9   : > { %1091 = vmatmul.msk.bf16.vlgmr.msra.gmra.mxu3 %vm476_vm0, %v814_v41 }
 0x3da   : > { %1406 = shalt.err (!%p1403_p9)
}
 0x3db   : > { %s1499_s23 = smov 128   ;;  %s1830_s28 = smov 8   ;;  %v1212_v42 = vld [vmem:[%s1810_s8] ss:$0 sm:$0xff] }
 0x3dc   : > { %1127 = dma.vmem_to_hbm [thread:$0]  (%p1642_p4), %s885_s7, 512, %s887_s21, %s858_s30, %s1499_s23, %s1499_s23, %s1830_s28  }
 0x3dd   : > { %s1094_s1 = sshll.u32 %s1579_s20, 3  ;;  %s1046_s3 = sshll.u32 %s1673_s17, 3 }
 0x3de   : > { %s868_s12 = scalar_lea.hbm %s1811_s9, %s1094_s1  ;;  %s446_s19 = scalar_lea.vmem [#allocation12], %s1046_s3 }
 0x3df   : > { %s870_s24 = sshll.u32 %s446_s19, 4  ;;  %s872_s22 = sshll.u32 %s868_s12, 4  ;;  %s871_s24 = int_to_ptr.vmem [resolvable:$true] %s870_s24  ;;  %s873_s22 = int_to_ptr.hbm [resolvable:$true] %s872_s22 }
 0x3e0   : > { %s853_s20 = scalar_lea.sflag [#allocation5], %s1673_s17  ;;  %s1421_s7 = sshra.s32 %s873_s22, 4  ;;  %s1422_s7 = int_to_ptr.hbm [resolvable:$true] %s1421_s7 }
 0x3e1   : > { %s1423_s21 = scalar_lea.hbm %s1422_s7, 8  ;;  %s1427_s28 = scalar_lea.hbm %s1811_s9, 16 }
 0x3e2   : > { %p1424_p10 = scmp.ne.s32.totalorder %s1422_s7, %s1423_s21  ;;  %p1428_p0 = scmp.lt.s32.totalorder %s1422_s7, %s1811_s9 }
 0x3e3   : > { %p1429_p2 = scmp.lt.s32.totalorder %s1427_s28, %s1423_s21 }
 0x3e4   : > { %p1425_p13 = pnand %p1424_p10, %p1642_p4 }
 0x3e5   : > { %p1430_p1 = por %p1429_p2, %p1428_p0 }
 0x3e6   : > { %p1426_p11 = pneg %p1425_p13 }
 0x3e8   : > { %p1431_p3 = pnand %p1430_p1, %p1426_p11 }
 0x45c   : > { %v847_v43 = vpop.f32.mrf.mxu3 }
 0x45d   : > { %v848_v44 = vadd.f32 %v1212_v42, %v847_v43 }
 0x45f   : > { %851 = vst.msk [vmem:[%s446_s19] sm:$0xff] %vm476_vm0, %v848_v44 }
 0x460   : > { %1434 = shalt.err (!%p1431_p3)
}
 0x461   : > { %1126 = dma.vmem_to_hbm [thread:$0]  (%p1642_p4), %s871_s24, 128, %s873_s22, %s853_s20  }
 0x464   : > { %v849_v45 = vpop.f32.mrf.mxu3 }
 0x465 PF: > { %s901_s17 = sand.u32 1, %s1473_s13   ;;  %p1831_p5 = scmp.ge.s32.totalorder %s1485_s16, 2 }
 0x466   : > { %s902_s5 = scalar_lea.sflag [#allocation5], %s901_s17 }
 0x467   : > { %p1148_p12 = pnand %p1831_p5, %p1646_p6 }
 0x469   : > { %p1149_p7 = pneg %p1148_p12 }
 0x46b   : > { %1464 = dma.done.wait (%p1149_p7), %s902_s5, 128  }
 0x46c   : > { %1466 = vsyncadd (%p1149_p7), %s902_s5, 4294967168  ;;  %s912_s29 = scalar_lea.sflag [#allocation14], %s901_s17 }
 0x46d   : > { %1468 = dma.done.wait (%p1149_p7), %s912_s29, 512  }
 0x46e   : > { %1470 = vsyncadd (%p1149_p7), %s912_s29, 4294966784  ;;  %s1832_s18 = sld [smem:[#allocation20_spill]]  ;;  %p29_p4 = scmp.ge.s32.totalorder %s1616_s11, 4  }
 0x46f   : > { %s1833_s13 = smov %s1477_s14  ;;  %s1834_s14 = smov %s1481_s15 }
 0x470   : > { %s1836_s16 = smov %s1616_s11  ;;  %31 = sbr.rel (!%p29_p4) target bundleno = 14 (0xe), region = 134 }
 0x474   : > { %s1835_s15 = smov %s1832_s18 }
 0x475   :  { %918 = vsyncpa [#allocation4], 1 }
 0x476   :  { %920 = vsyncpa [#allocation4 + $0x1], 1 }
 0x477   :  { %921 = vsyncpa [#allocation7], 1 }
 0x478   :  { %922 = vsyncpa [#allocation10], 1 }
 0x479   :  { %923 = vsyncpa [#allocation5], 1 }
 0x47a   :  { %925 = vsyncpa [#allocation5 + $0x1], 1 }
 0x47b   :  { %926 = vsyncpa [#allocation14], 1 }
 0x47c   :  { %928 = vsyncpa [#allocation14 + $0x1], 1 }

</bundles_post_ra>
